<compile_context>
chip_gen: v5e
topology: v5e:2x2
jax: 0.10.0
libtpu: 0.0.40
codegen_flags: <defaults>
</compile_context>

<pallas_src>
import functools
import math

import numpy as np
import jax
import jax.numpy as jnp
from jax.experimental import pallas as pl
from jax.experimental.pallas import tpu as pltpu


def _gjs_kernel(params_ref, x_ref, out_ref, acc_ref, *, d, k, n, tile_s, dual):
    """One grid step: accumulate the weighted-integrand sum over a tile of N.

    Refs:
      params_ref : SMEM (P,) f32 packed parameters:
                   [q_mean(d), q_cinv(d*d), q_logdet, alpha,
                    then per component: mean(d), cinv(d*d), weight, logdet]
      x_ref      : VMEM (d, tile_s, 128) samples (lane-dense tile of N)
      out_ref    : SMEM (1,) scalar loss (written on last grid step)
      acc_ref    : SMEM (1,) scratch accumulator (persists across grid)
    """
    pid = pl.program_id(0)
    last = pl.num_programs(0) - 1
    const = 0.5 * d * math.log(2.0 * math.pi)

    # Static offsets into the packed parameter vector.
    off_qmean = 0
    off_qcinv = d
    off_qlogdet = d + d * d
    off_alpha = off_qlogdet + 1
    comp_base = off_alpha + 1
    comp_len = d + d * d + 2

    @pl.when(pid == 0)
    def _():
        acc_ref[0] = jnp.float32(0.0)

    alpha = params_ref[off_alpha]

    # Load each of the d rows of x once; reused for q and every component.
    x_rows = [x_ref[i] for i in range(d)]            # each (tile_s, 128)

    def quad_form(z_rows, coef):
        # z^T A z via symmetric fold: diag terms + paired off-diagonals.
        q = None
        for i in range(d):
            t = coef(i, i) * (z_rows[i] * z_rows[i])
            q = t if q is None else q + t
            for j in range(i + 1, d):
                q = q + (coef(i, j) + coef(j, i)) * (z_rows[i] * z_rows[j])
        return q

    # log q(x)
    zq = [x_rows[i] - params_ref[off_qmean + i] for i in range(d)]
    quad_q = quad_form(zq, lambda i, j: params_ref[off_qcinv + i * d + j])
    lqx = -0.5 * quad_q - 0.5 * params_ref[off_qlogdet] - const

    # p(x) = sum_k w_k N(x; m_k, C_k)   (p_tot == exp(lpx), reused below)
    p_tot = jnp.zeros_like(lqx)
    for kk in range(k):
        base = comp_base + kk * comp_len
        zk = [x_rows[i] - params_ref[base + i] for i in range(d)]
        quad_k = quad_form(zk, lambda i, j: params_ref[base + d + i * d + j])
        w_k = params_ref[base + d + d * d]
        logdet_k = params_ref[base + d + d * d + 1]
        p_tot = p_tot + w_k * jnp.exp(-0.5 * quad_k - 0.5 * logdet_k - const)
    lpx = jnp.log(p_tot)
    diff = lpx - lqx

    if dual:
        # exp(lqx)^a * exp(lpx)^(1-a) == exp(a*lqx + (1-a)*lpx); single exp.
        integrand = jnp.exp(alpha * lqx + (1.0 - alpha) * lpx) * diff
    else:
        # Fused: (1-a)^2*exp(lqx)*diff + a^2*exp(lpx)*diff, with exp(lpx)=p_tot.
        integrand = diff * ((1.0 - alpha) * (1.0 - alpha) * jnp.exp(lqx)
                            + alpha * alpha * p_tot)

    # Mask padded samples (only emitted when N is not a multiple of the tile).
    if n % (tile_s * 128) != 0:
        row = jax.lax.broadcasted_iota(jnp.int32, (tile_s, 128), 0)
        lane = jax.lax.broadcasted_iota(jnp.int32, (tile_s, 128), 1)
        gidx = (pid * tile_s + row) * 128 + lane
        integrand = jnp.where(gidx < n, integrand, 0.0)

    acc_ref[0] = acc_ref[0] + jnp.sum(integrand)

    @pl.when(pid == last)
    def _():
        total = acc_ref[0] * (1.0 / n)
        if dual:
            out_ref[0] = ((1.0 - alpha) ** 2 - alpha ** 2) * total
        else:
            out_ref[0] = total


def _inv_logdet(C):
    """Inverse and log-det: closed form for 2x2, slogdet/inv fallback."""
    if C.shape[-1] == 2:
        a = C[..., 0, 0]
        b = C[..., 0, 1]
        c = C[..., 1, 0]
        e = C[..., 1, 1]
        det = a * e - b * c
        inv = jnp.stack(
            [jnp.stack([e, -b], axis=-1), jnp.stack([-c, a], axis=-1)],
            axis=-2) / det[..., None, None]
        return inv, jnp.log(det)
    _, logdet = jnp.linalg.slogdet(C)
    return jnp.linalg.inv(C), logdet


def gjs_train_alpha_loss(x_dn, q_mean, q_cov, p_means, p_covs, p_weights,
                         alpha, dual=False, tile_s=8):
    """x_dn: (D, N) samples. Returns the scalar GJS loss."""
    d, n = x_dn.shape
    k = p_means.shape[0]

    # Tiny (d x d) algebra in closed form (no jnp.linalg dispatch for d=2).
    q_cinv, q_logdet = _inv_logdet(q_cov)
    p_cinvs, p_logdets = _inv_logdet(p_covs)

    # Pack everything into one flat 1-D SMEM array.
    parts = [q_mean.reshape(-1), q_cinv.reshape(-1),
             q_logdet.reshape(1), jnp.asarray(alpha, jnp.float32).reshape(1)]
    for kk in range(k):
        parts += [p_means[kk].reshape(-1), p_cinvs[kk].reshape(-1),
                  p_weights[kk].reshape(1), p_logdets[kk].reshape(1)]
    params = jnp.concatenate([p.astype(jnp.float32) for p in parts])

    # Lane-dense layout: pad N to a multiple of tile_s*128 and fold it onto
    # (sublane, lane); grid over the N tiles with an SMEM accumulator.
    block = tile_s * 128
    n_pad = ((n + block - 1) // block) * block
    x_pad = jnp.zeros((d, n_pad), jnp.float32).at[:, :n].set(
        x_dn.astype(jnp.float32))
    s_total = n_pad // 128
    x_tiles = x_pad.reshape(d, s_total, 128)
    grid = (s_total // tile_s,)

    kernel = functools.partial(_gjs_kernel, d=d, k=k, n=n, tile_s=tile_s,
                               dual=dual)
    out = pl.pallas_call(
        kernel,
        out_shape=jax.ShapeDtypeStruct((1,), jnp.float32),
        grid=grid,
        in_specs=[
            pl.BlockSpec(memory_space=pltpu.MemorySpace.SMEM),    # packed params
            pl.BlockSpec((d, tile_s, 128), lambda s: (0, s, 0)),  # x tile (VMEM)
        ],
        out_specs=pl.BlockSpec(memory_space=pltpu.MemorySpace.SMEM),
        scratch_shapes=[pltpu.SMEM((1,), jnp.float32)],
        compiler_params=pltpu.CompilerParams(
            dimension_semantics=("arbitrary",)),
    )(params, x_tiles)
    return out[0]


def _reference_loss(x_nd1, q_mean, q_cov, p_means, p_covs, p_weights, alpha):
    """Pure-JAX transcription of the PyTorch forward (dual=False)."""
    d = q_mean.shape[0]

    def log_normal(X, m, C):
        Z = X - m                                           # (N, D, 1)
        CZ = jnp.einsum('ij,njk->nik', jnp.linalg.inv(C), Z)
        return (-jnp.sum(Z * CZ, axis=1) / 2.0
                - jnp.log(jnp.linalg.det(C)) / 2.0
                - d / 2.0 * jnp.log(2.0 * jnp.pi))          # (N, 1)

    lqx = log_normal(x_nd1, q_mean, q_cov)
    p = jnp.zeros((x_nd1.shape[0], 1), jnp.float32)
    for kk in range(p_means.shape[0]):
        p = p + p_weights[kk] * jnp.exp(
            log_normal(x_nd1, p_means[kk].reshape(-1, 1), p_covs[kk]))
    lpx = jnp.log(p)
    kl_1 = jnp.mean(jnp.exp(lqx) * (lpx - lqx))
    kl_2 = jnp.mean(jnp.exp(lpx) * (lpx - lqx))
    return (1.0 - alpha) ** 2 * kl_1 + alpha ** 2 * kl_2


if __name__ == "__main__":
    D = 2          # dimensions (module default)
    N = 256        # sample_size
    ALPHA = 0.5    # module default
    DUAL = False   # module default

    key = jax.random.PRNGKey(0)
    # PyTorch-layout sample data: (N, D, 1) column vectors.
    x_nd1 = jax.random.normal(key, (N, D, 1), dtype=jnp.float32)
    x_dn = jnp.transpose(x_nd1[:, :, 0], (1, 0))            # (D, N) kernel layout

    # Deterministic parameter init (matches BaseDivergence defaults).
    q_mean = jnp.ones((D, 1), jnp.float32)                  # self.mean
    q_cov = jnp.eye(D, dtype=jnp.float32)                   # self.covariance
    # Deterministic GMM "dist_params": (mean, covariance, weight) per component.
    p_means = jnp.array([[1.5, 0.5],
                         [-1.0, 2.0]], jnp.float32)
    p_covs = jnp.array([[[1.0, 0.2], [0.2, 1.5]],
                        [[0.8, 0.0], [0.0, 0.6]]], jnp.float32)
    p_weights = jnp.array([0.4, 0.6], jnp.float32)

    loss = jax.block_until_ready(
        gjs_train_alpha_loss(x_dn, q_mean, q_cov, p_means, p_covs, p_weights,
                             ALPHA, dual=DUAL))
    ref = jax.block_until_ready(
        _reference_loss(x_nd1, q_mean, q_cov, p_means, p_covs, p_weights, ALPHA))

    if np.allclose(np.asarray(loss), np.asarray(ref), rtol=1e-3, atol=1e-5):
        print("KERNEL_OK")
    else:
        print(f"MISMATCH pallas={float(loss)} ref={float(ref)}")
</pallas_src>

<mosaic_0001>
module attributes {stable_mosaic.version = 11 : i64} {
  func.func @_gjs_kernel(%arg0: i32, %arg1: memref<24xf32, #tpu.memory_space<smem>>, %arg2: memref<2x8x128xf32, #tpu.memory_space<vmem>>, %arg3: memref<1xf32, #tpu.memory_space<smem>>, %arg4: memref<1xf32, #tpu.memory_space<smem>>) attributes {dimension_semantics = [#tpu.dimension_semantics<arbitrary>], iteration_bounds = array<i64: 1>, scalar_prefetch = 0 : i64, scratch_operands = 1 : i64, tpu.core_type = #tpu.core_type<tc>, window_params = [{transform_indices = @transform_0, window_bounds = array<i64: 24>}, {transform_indices = @transform_1, window_bounds = array<i64: 2, 8, 128>}, {transform_indices = @transform_2, window_bounds = array<i64: 1>}]} {
    %c0_i32 = arith.constant 0 : i32
    %0 = arith.cmpi eq, %arg0, %c0_i32 : i32
    %1 = arith.extui %0 : i1 to i32
    %c0_i32_0 = arith.constant 0 : i32
    %2 = arith.cmpi ne, %1, %c0_i32_0 : i32
    scf.if %2 {
      %cst_24 = arith.constant 0.000000e+00 : f32
      %c0_25 = arith.constant 0 : index
      %144 = memref.load %arg4[%c0_25] : memref<1xf32, #tpu.memory_space<smem>>
      memref.store %cst_24, %arg4[%c0_25] : memref<1xf32, #tpu.memory_space<smem>>
    } else {
    }
    %c7 = arith.constant 7 : index
    %3 = memref.load %arg1[%c7] : memref<24xf32, #tpu.memory_space<smem>>
    %c0 = arith.constant 0 : index
    %c0_1 = arith.constant 0 : index
    %c0_2 = arith.constant 0 : index
    %4 = vector.load %arg2[%c0, %c0_1, %c0_2] : memref<2x8x128xf32, #tpu.memory_space<vmem>>, vector<1x8x128xf32>
    %5 = vector.shape_cast %4 : vector<1x8x128xf32> to vector<8x128xf32>
    %c1 = arith.constant 1 : index
    %c0_3 = arith.constant 0 : index
    %c0_4 = arith.constant 0 : index
    %6 = vector.load %arg2[%c1, %c0_3, %c0_4] : memref<2x8x128xf32, #tpu.memory_space<vmem>>, vector<1x8x128xf32>
    %7 = vector.shape_cast %6 : vector<1x8x128xf32> to vector<8x128xf32>
    %c0_5 = arith.constant 0 : index
    %8 = memref.load %arg1[%c0_5] : memref<24xf32, #tpu.memory_space<smem>>
    %9 = vector.broadcast %8 : f32 to vector<8x128xf32>
    %10 = arith.subf %5, %9 : vector<8x128xf32>
    %c1_6 = arith.constant 1 : index
    %11 = memref.load %arg1[%c1_6] : memref<24xf32, #tpu.memory_space<smem>>
    %12 = vector.broadcast %11 : f32 to vector<8x128xf32>
    %13 = arith.subf %7, %12 : vector<8x128xf32>
    %c2 = arith.constant 2 : index
    %14 = memref.load %arg1[%c2] : memref<24xf32, #tpu.memory_space<smem>>
    %15 = arith.mulf %10, %10 : vector<8x128xf32>
    %16 = vector.broadcast %14 : f32 to vector<8x128xf32>
    %17 = arith.mulf %16, %15 : vector<8x128xf32>
    %c3 = arith.constant 3 : index
    %18 = memref.load %arg1[%c3] : memref<24xf32, #tpu.memory_space<smem>>
    %c4 = arith.constant 4 : index
    %19 = memref.load %arg1[%c4] : memref<24xf32, #tpu.memory_space<smem>>
    %20 = arith.addf %18, %19 : f32
    %21 = arith.mulf %10, %13 : vector<8x128xf32>
    %22 = vector.broadcast %20 : f32 to vector<8x128xf32>
    %23 = arith.mulf %22, %21 : vector<8x128xf32>
    %24 = arith.addf %17, %23 : vector<8x128xf32>
    %c5 = arith.constant 5 : index
    %25 = memref.load %arg1[%c5] : memref<24xf32, #tpu.memory_space<smem>>
    %26 = arith.mulf %13, %13 : vector<8x128xf32>
    %27 = vector.broadcast %25 : f32 to vector<8x128xf32>
    %28 = arith.mulf %27, %26 : vector<8x128xf32>
    %29 = arith.addf %24, %28 : vector<8x128xf32>
    %cst = arith.constant -5.000000e-01 : f32
    %30 = vector.broadcast %cst : f32 to vector<8x128xf32>
    %31 = arith.mulf %30, %29 : vector<8x128xf32>
    %c6 = arith.constant 6 : index
    %32 = memref.load %arg1[%c6] : memref<24xf32, #tpu.memory_space<smem>>
    %cst_7 = arith.constant 5.000000e-01 : f32
    %33 = arith.mulf %cst_7, %32 : f32
    %34 = vector.broadcast %33 : f32 to vector<8x128xf32>
    %35 = arith.subf %31, %34 : vector<8x128xf32>
    %cst_8 = arith.constant 1.83787704 : f32
    %36 = vector.broadcast %cst_8 : f32 to vector<8x128xf32>
    %37 = arith.subf %35, %36 : vector<8x128xf32>
    %cst_9 = arith.constant 0.000000e+00 : f32
    %38 = vector.broadcast %cst_9 : f32 to vector<8x128xf32>
    %c8 = arith.constant 8 : index
    %39 = memref.load %arg1[%c8] : memref<24xf32, #tpu.memory_space<smem>>
    %40 = vector.broadcast %39 : f32 to vector<8x128xf32>
    %41 = arith.subf %5, %40 : vector<8x128xf32>
    %c9 = arith.constant 9 : index
    %42 = memref.load %arg1[%c9] : memref<24xf32, #tpu.memory_space<smem>>
    %43 = vector.broadcast %42 : f32 to vector<8x128xf32>
    %44 = arith.subf %7, %43 : vector<8x128xf32>
    %c10 = arith.constant 10 : index
    %45 = memref.load %arg1[%c10] : memref<24xf32, #tpu.memory_space<smem>>
    %46 = arith.mulf %41, %41 : vector<8x128xf32>
    %47 = vector.broadcast %45 : f32 to vector<8x128xf32>
    %48 = arith.mulf %47, %46 : vector<8x128xf32>
    %c11 = arith.constant 11 : index
    %49 = memref.load %arg1[%c11] : memref<24xf32, #tpu.memory_space<smem>>
    %c12 = arith.constant 12 : index
    %50 = memref.load %arg1[%c12] : memref<24xf32, #tpu.memory_space<smem>>
    %51 = arith.addf %49, %50 : f32
    %52 = arith.mulf %41, %44 : vector<8x128xf32>
    %53 = vector.broadcast %51 : f32 to vector<8x128xf32>
    %54 = arith.mulf %53, %52 : vector<8x128xf32>
    %55 = arith.addf %48, %54 : vector<8x128xf32>
    %c13 = arith.constant 13 : index
    %56 = memref.load %arg1[%c13] : memref<24xf32, #tpu.memory_space<smem>>
    %57 = arith.mulf %44, %44 : vector<8x128xf32>
    %58 = vector.broadcast %56 : f32 to vector<8x128xf32>
    %59 = arith.mulf %58, %57 : vector<8x128xf32>
    %60 = arith.addf %55, %59 : vector<8x128xf32>
    %c14 = arith.constant 14 : index
    %61 = memref.load %arg1[%c14] : memref<24xf32, #tpu.memory_space<smem>>
    %c15 = arith.constant 15 : index
    %62 = memref.load %arg1[%c15] : memref<24xf32, #tpu.memory_space<smem>>
    %cst_10 = arith.constant -5.000000e-01 : f32
    %63 = vector.broadcast %cst_10 : f32 to vector<8x128xf32>
    %64 = arith.mulf %63, %60 : vector<8x128xf32>
    %cst_11 = arith.constant 5.000000e-01 : f32
    %65 = arith.mulf %cst_11, %62 : f32
    %66 = vector.broadcast %65 : f32 to vector<8x128xf32>
    %67 = arith.subf %64, %66 : vector<8x128xf32>
    %cst_12 = arith.constant 1.83787704 : f32
    %68 = vector.broadcast %cst_12 : f32 to vector<8x128xf32>
    %69 = arith.subf %67, %68 : vector<8x128xf32>
    %70 = math.exp %69 : vector<8x128xf32>
    %71 = vector.broadcast %61 : f32 to vector<8x128xf32>
    %72 = arith.mulf %71, %70 : vector<8x128xf32>
    %73 = arith.addf %38, %72 : vector<8x128xf32>
    %c16 = arith.constant 16 : index
    %74 = memref.load %arg1[%c16] : memref<24xf32, #tpu.memory_space<smem>>
    %75 = vector.broadcast %74 : f32 to vector<8x128xf32>
    %76 = arith.subf %5, %75 : vector<8x128xf32>
    %c17 = arith.constant 17 : index
    %77 = memref.load %arg1[%c17] : memref<24xf32, #tpu.memory_space<smem>>
    %78 = vector.broadcast %77 : f32 to vector<8x128xf32>
    %79 = arith.subf %7, %78 : vector<8x128xf32>
    %c18 = arith.constant 18 : index
    %80 = memref.load %arg1[%c18] : memref<24xf32, #tpu.memory_space<smem>>
    %81 = arith.mulf %76, %76 : vector<8x128xf32>
    %82 = vector.broadcast %80 : f32 to vector<8x128xf32>
    %83 = arith.mulf %82, %81 : vector<8x128xf32>
    %c19 = arith.constant 19 : index
    %84 = memref.load %arg1[%c19] : memref<24xf32, #tpu.memory_space<smem>>
    %c20 = arith.constant 20 : index
    %85 = memref.load %arg1[%c20] : memref<24xf32, #tpu.memory_space<smem>>
    %86 = arith.addf %84, %85 : f32
    %87 = arith.mulf %76, %79 : vector<8x128xf32>
    %88 = vector.broadcast %86 : f32 to vector<8x128xf32>
    %89 = arith.mulf %88, %87 : vector<8x128xf32>
    %90 = arith.addf %83, %89 : vector<8x128xf32>
    %c21 = arith.constant 21 : index
    %91 = memref.load %arg1[%c21] : memref<24xf32, #tpu.memory_space<smem>>
    %92 = arith.mulf %79, %79 : vector<8x128xf32>
    %93 = vector.broadcast %91 : f32 to vector<8x128xf32>
    %94 = arith.mulf %93, %92 : vector<8x128xf32>
    %95 = arith.addf %90, %94 : vector<8x128xf32>
    %c22 = arith.constant 22 : index
    %96 = memref.load %arg1[%c22] : memref<24xf32, #tpu.memory_space<smem>>
    %c23 = arith.constant 23 : index
    %97 = memref.load %arg1[%c23] : memref<24xf32, #tpu.memory_space<smem>>
    %cst_13 = arith.constant -5.000000e-01 : f32
    %98 = vector.broadcast %cst_13 : f32 to vector<8x128xf32>
    %99 = arith.mulf %98, %95 : vector<8x128xf32>
    %cst_14 = arith.constant 5.000000e-01 : f32
    %100 = arith.mulf %cst_14, %97 : f32
    %101 = vector.broadcast %100 : f32 to vector<8x128xf32>
    %102 = arith.subf %99, %101 : vector<8x128xf32>
    %cst_15 = arith.constant 1.83787704 : f32
    %103 = vector.broadcast %cst_15 : f32 to vector<8x128xf32>
    %104 = arith.subf %102, %103 : vector<8x128xf32>
    %105 = math.exp %104 : vector<8x128xf32>
    %106 = vector.broadcast %96 : f32 to vector<8x128xf32>
    %107 = arith.mulf %106, %105 : vector<8x128xf32>
    %108 = arith.addf %73, %107 : vector<8x128xf32>
    %109 = math.log %108 : vector<8x128xf32>
    %110 = arith.subf %109, %37 : vector<8x128xf32>
    %cst_16 = arith.constant 1.000000e+00 : f32
    %111 = arith.subf %cst_16, %3 : f32
    %cst_17 = arith.constant 1.000000e+00 : f32
    %112 = arith.subf %cst_17, %3 : f32
    %113 = arith.mulf %111, %112 : f32
    %114 = math.exp %37 : vector<8x128xf32>
    %115 = vector.broadcast %113 : f32 to vector<8x128xf32>
    %116 = arith.mulf %115, %114 : vector<8x128xf32>
    %117 = arith.mulf %3, %3 : f32
    %118 = vector.broadcast %117 : f32 to vector<8x128xf32>
    %119 = arith.mulf %118, %108 : vector<8x128xf32>
    %120 = arith.addf %116, %119 : vector<8x128xf32>
    %121 = arith.mulf %110, %120 : vector<8x128xf32>
    %122 = tpu.iota {dimensions = array<i32: 0>} : vector<8x128xi32>
    %123 = tpu.iota {dimensions = array<i32: 1>} : vector<8x128xi32>
    %c8_i32 = arith.constant 8 : i32
    %124 = arith.muli %arg0, %c8_i32 : i32
    %125 = vector.broadcast %124 : i32 to vector<8x128xi32>
    %126 = arith.addi %125, %122 : vector<8x128xi32>
    %c128_i32 = arith.constant 128 : i32
    %127 = vector.broadcast %c128_i32 : i32 to vector<8x128xi32>
    %128 = arith.muli %126, %127 : vector<8x128xi32>
    %129 = arith.addi %128, %123 : vector<8x128xi32>
    %c256_i32 = arith.constant 256 : i32
    %130 = vector.broadcast %c256_i32 : i32 to vector<8x128xi32>
    %131 = arith.cmpi slt, %129, %130 : vector<8x128xi32>
    %cst_18 = arith.constant 0.000000e+00 : f32
    %132 = vector.broadcast %cst_18 : f32 to vector<8x128xf32>
    %133 = arith.select %131, %121, %132 : vector<8x128xi1>, vector<8x128xf32>
    %c0_19 = arith.constant 0 : index
    %134 = memref.load %arg4[%c0_19] : memref<1xf32, #tpu.memory_space<smem>>
    %135 = vector.shape_cast %133 : vector<8x128xf32> to vector<1x8x128xf32>
    %cst_20 = arith.constant dense<0.000000e+00> : vector<1xf32>
    %136 = vector.multi_reduction <add>, %135, %cst_20 [1, 2] : vector<1x8x128xf32> to vector<1xf32>
    %137 = vector.shape_cast %136 : vector<1xf32> to vector<1x1x1xf32>
    %138 = vector.extract %137[0, 0, 0] : f32 from vector<1x1x1xf32>
    %139 = arith.addf %134, %138 : f32
    %c0_21 = arith.constant 0 : index
    %140 = memref.load %arg4[%c0_21] : memref<1xf32, #tpu.memory_space<smem>>
    memref.store %139, %arg4[%c0_21] : memref<1xf32, #tpu.memory_space<smem>>
    %c0_i32_22 = arith.constant 0 : i32
    %141 = arith.cmpi eq, %arg0, %c0_i32_22 : i32
    %142 = arith.extui %141 : i1 to i32
    %c0_i32_23 = arith.constant 0 : i32
    %143 = arith.cmpi ne, %142, %c0_i32_23 : i32
    scf.if %143 {
      %c0_24 = arith.constant 0 : index
      %144 = memref.load %arg4[%c0_24] : memref<1xf32, #tpu.memory_space<smem>>
      %cst_25 = arith.constant 3.906250e-03 : f32
      %145 = arith.mulf %144, %cst_25 : f32
      %c0_26 = arith.constant 0 : index
      %146 = memref.load %arg3[%c0_26] : memref<1xf32, #tpu.memory_space<smem>>
      memref.store %145, %arg3[%c0_26] : memref<1xf32, #tpu.memory_space<smem>>
    } else {
    }
    return
  }
  func.func @transform_0(%arg0: i32) -> i32 {
    %c0_i32 = arith.constant 0 : i32
    %c0_i32_0 = arith.constant 0 : i32
    return %c0_i32 : i32
  }
  func.func @transform_1(%arg0: i32) -> (i32, i32, i32) {
    %c0_i32 = arith.constant 0 : i32
    %c0_i32_0 = arith.constant 0 : i32
    %c0_i32_1 = arith.constant 0 : i32
    return %c0_i32, %arg0, %c0_i32_0 : i32, i32, i32
  }
  func.func @transform_2(%arg0: i32) -> i32 {
    %c0_i32 = arith.constant 0 : i32
    %c0_i32_0 = arith.constant 0 : i32
    return %c0_i32 : i32
  }
}

</mosaic_0001>

<bundles_post_ra>
// kernel: tpu_custom_call.1
= control target key start
LH: loop header
LB: loop body
LE: loop exit
PB: predicated region body
PF: predicated region fallthrough
CT: control target
= control target key end

     0   :  { %7 = vsyncpa [#allocation5], 0  ;;  %s348_s0 = inlined_call_operand.hbm [shape: f32[24], index: 0, kind: input, shape index: {}]   ;;  %s349_s1 = inlined_call_operand.hbm [shape: f32[2,8,128], index: 1, kind: input, shape index: {}]   ;;  %s350_s2 = inlined_call_operand.hbm [shape: f32[1], index: 2, kind: output, shape index: {}]  }
   0x1   :  { %8 = vsyncpa [#allocation4], 0 }
   0x2   :  { %9 = vsyncpa [#allocation6], 0  ;;  %s15_s11 = sshll.u32 %s348_s0, 4  ;;  %s23_s14 = sshll.u32 %s349_s1, 4  ;;  %s16_s11 = int_to_ptr.hbm [resolvable:$true] %s15_s11  ;;  %s24_s14 = int_to_ptr.hbm [resolvable:$true] %s23_s14 }
   0x3   :  { %s304_s15 = smov [#allocation3]   ;;  %s305_s16 = smov [#allocation7]  }
   0x4   :  { %18 = dma.hbm_to_smem %s16_s11, 16, %s304_s15, [#allocation5]  }
   0x5   :  { %s25_s17 = sshll.u32 %s305_s16, 4  ;;  %s306_s18 = smov 128   ;;  %s26_s17 = int_to_ptr.vmem [resolvable:$true] %s25_s17 }
   0x6   :  { %s307_s19 = smov 8  }
   0x7   :  { %31 = dma.hbm_to_vmem [thread:$0]  %s24_s14, 256, %s26_s17, [#allocation4], %s306_s18, %s306_s18, %s307_s19  }
   0x8   :  { %298 = dma.done.wait [#allocation5], 16  }
   0x9   :  { %299 = vsyncadd [#allocation5], 4294967280 }
   0xa   :  { %300 = dma.done.wait [#allocation4], 256  }
   0xb   :  { %301 = vsyncadd [#allocation4], 4294967040 }
   0xc   :  { %40 = sfence }
   0xd   :  { %s51_s0 = sld [smem:[#allocation3]]  ;;  %v48_v2 = vld [vmem:[#allocation7] sm:$0xff]  ;;  %v50_v3 = vld [vmem:[#allocation7 + $0x8] sm:$0xff] }
   0xe   :  { %s210_s20 = sld [smem:[#allocation3 + $0x1]] }
   0xf   :  { %s330_s21 = sld [smem:[#allocation3 + $0x3]] }
  0x10   :  { %s213_s1 = sld [smem:[#allocation3 + $0x4]] }
  0x11   :  { %s332_s22 = sld [smem:[#allocation3 + $0x2]] }
  0x12   :  { %s334_s23 = sld [smem:[#allocation3 + $0x5]] }
  0x13   :  { %s217_s24 = sld [smem:[#allocation3 + $0x8]]  ;;  %v52_v0 = vstv %s51_s0 }
  0x14   :  { %s218_s25 = sld [smem:[#allocation3 + $0x9]]  ;;  %v55_v1 = vstv %s210_s20  ;;  %v53_v4 = vsub.f32 %v48_v2, %v52_v0 }
  0x15   :  { %s219_s26 = sld [smem:[#allocation3 + $0xa]]  ;;  %v56_v5 = vsub.f32 %v50_v3, %v55_v1 }
  0x16   :  { %s63_s27 = sadd.f32 %s213_s1, %s330_s21  ;;  %v58_v10 = vmul.f32 %v53_v4, %v53_v4 }
  0x17   :  { %s220_s28 = sld [smem:[#allocation3 + $0xb]]  ;;  %v64_v11 = vmul.f32 %v56_v5, %v53_v4  ;;  %v59_v14 = vstv %s332_s22  ;;  %v69_v22 = vmul.f32 %v56_v5, %v56_v5 }
  0x18   :  { %s221_s29 = sld [smem:[#allocation3 + $0xc]]  ;;  %v65_v15 = vstv %s63_s27  ;;  %v60_v20 = vmul.f32 %v59_v14, %v58_v10  ;;  %v70_v24 = vstv %s334_s23  ;;  %s197_s23 = sshll.u32 %s350_s2, 4  ;;  %s198_s23 = int_to_ptr.hbm [resolvable:$true] %s197_s23 }
  0x19   :  { %v80_v6 = vstv %s217_s24  ;;  %s222_s30 = sld [smem:[#allocation3 + $0xd]]  ;;  %v66_v21 = vmul.f32 %v65_v15, %v64_v11  ;;  %v71_v31 = vmul.f32 %v70_v24, %v69_v22 }
  0x1a   :  { %s337_s3 = sld [smem:[#allocation3 + $0x6]]  ;;  %v81_v7 = vsub.f32 %v48_v2, %v80_v6  ;;  %v83_v8 = vstv %s218_s25 }
  0x1b   :  { %v84_v9 = vsub.f32 %v50_v3, %v83_v8  ;;  %s339_s4 = sld [smem:[#allocation3 + $0xf]]  ;;  %v87_v13 = vstv %s219_s26  ;;  %v67_v30 = vadd.f32 %v66_v21, %v60_v20  ;;  %s308_s26 = smov [#allocation8]  }
  0x1c   :  { %v86_v12 = vmul.f32 %v81_v7, %v81_v7  ;;  %s226_s5 = sld [smem:[#allocation3 + $0x10]] }
  0x1d   :  { %v92_v16 = vmul.f32 %v84_v9, %v81_v7  ;;  %v97_v17 = vmul.f32 %v84_v9, %v84_v9  ;;  %s227_s6 = sld [smem:[#allocation3 + $0x11]]  ;;  %v72_v43 = vadd.f32 %v71_v31, %v67_v30 }
  0x1e   :  { %s91_s7 = sadd.f32 %s221_s29, %s220_s28  ;;  %v88_v18 = vmul.f32 %v87_v13, %v86_v12 }
  0x1f   :  { %v98_v19 = vstv %s222_s30  ;;  %s228_s8 = sld [smem:[#allocation3 + $0x12]]  ;;  %v73_v50 = vmul.f32 -0.5, %v72_v43 }
  0x20   :  { %v93_v23 = vstv %s91_s7  ;;  %s229_s9 = sld [smem:[#allocation3 + $0x13]]  ;;  %v99_v26 = vmul.f32 %v98_v19, %v97_v17  ;;  %s75_s15 = smul.f32 0.5, %s337_s3 }
  0x21   :  { %v94_v25 = vmul.f32 %v93_v23, %v92_v16  ;;  %s230_s10 = sld [smem:[#allocation3 + $0x14]]  ;;  %s104_s11 = smul.f32 0.5, %s339_s4 }
  0x22   :  { %v114_v27 = vstv %s226_s5  ;;  %s231_s12 = sld [smem:[#allocation3 + $0x15]]  ;;  %v76_v51 = vstv %s75_s15 }
  0x23   :  { %v95_v28 = vadd.f32 %v94_v25, %v88_v18  ;;  %v115_v29 = vsub.f32 %v48_v2, %v114_v27  ;;  %v117_v32 = vstv %s227_s6  ;;  %s233_s13 = sld [smem:[#allocation3 + $0x17]]  ;;  %v105_v37 = vstv %s104_s11 }
  0x24   :  { %v118_v34 = vsub.f32 %v50_v3, %v117_v32  ;;  %v77_v56 = vsub.f32 %v73_v50, %v76_v51  ;;  %s223_s17 = sld [smem:[#allocation3 + $0xe]]  ;;  %v161_v2 = vlaneseq }
  0x25   :  { %v100_v33 = vadd.f32 %v99_v26, %v95_v28  ;;  %v120_v35 = vmul.f32 %v115_v29, %v115_v29  ;;  %v121_v36 = vstv %s228_s8  ;;  %s209_s18 = sld [smem:[#allocation3 + $0x7]] }
  0x26   :  { %v126_v39 = vmul.f32 %v118_v34, %v115_v29  ;;  %v131_v40 = vmul.f32 %v118_v34, %v118_v34  ;;  %s232_s19 = sld [smem:[#allocation3 + $0x16]]  ;;  %v216_v59 = vadd.f32 -1.837877, %v77_v56  ;;  %v162_v6 = vshrl.u32 %v161_v2, 7 }
  0x27   :  { %v103_v38 = vmul.f32 -0.5, %v100_v33  ;;  %s125_s14 = sadd.f32 %s230_s10, %s229_s9  ;;  %v122_v41 = vmul.f32 %v121_v36, %v120_v35  ;;  %v164_v10 = vand.u32 127, %v161_v2 }
  0x28   :  { %v132_v42 = vstv %s231_s12  ;;  %v152_v61 = vmul.f32 1.442695, %v216_v59  ;;  %v168_v11 = vmul.u32 128, %v162_v6 }
  0x29   :  { %v106_v44 = vsub.f32 %v103_v38, %v105_v37  ;;  %v127_v45 = vstv %s125_s14  ;;  %v133_v47 = vmul.f32 %v132_v42, %v131_v40  ;;  %s138_s16 = smul.f32 0.5, %s233_s13 }
  0x2a   :  { %v128_v46 = vmul.f32 %v127_v45, %v126_v39  ;;  %v110_v63 = vstv %s223_s17  ;;  %v169_v15 = vadd.s32 %v168_v11, %v164_v10 }
  0x2b   :  { %v225_v48 = vadd.f32 -1.837877, %v106_v44  ;;  %v139_v53 = vstv %s138_s16  ;;  %s150_s0 = ssub.f32 1.0, %s209_s18  ;;  %s156_s20 = smul.f32 %s209_s18, %s209_s18 }
  0x2c   :  { %v129_v49 = vadd.f32 %v128_v46, %v122_v41  ;;  %v144_v0 = vstv %s232_s19  ;;  %vm170_vm0 = vcmp.lt.s32.totalorder %v169_v15, 256 }
  0x2d   :  { %v108_v54 = vmul.f32 1.442695, %v225_v48  ;;  %s151_s21 = smul.f32 %s150_s0, %s150_s0  ;;  %v157_v9 = vstv %s156_s20 }
  0x2e   :  { %v134_v52 = vadd.f32 %v133_v47, %v129_v49 }
  0x2f   :  { %242 = vpow2.f32 %v108_v54  ;;  %v154_v8 = vstv %s151_s21 }
  0x30   :  { %v137_v55 = vmul.f32 -0.5, %v134_v52 }
  0x32   :  { %v140_v57 = vsub.f32 %v137_v55, %v139_v53 }
  0x34   :  { %v234_v58 = vadd.f32 -1.837877, %v140_v57 }
  0x35   :  { %v243_v62 = vpop.eup %242 }
  0x36   :  { %v142_v60 = vmul.f32 1.442695, %v234_v58  ;;  %v111_v1 = vmul.f32 %v243_v62, %v110_v63 }
  0x38   :  { %244 = vpow2.f32 %v142_v60 }
  0x39   :  { %246 = vpow2.f32 %v152_v61 }
  0x3e   :  { %v245_v3 = vpop.eup %244 }
  0x3f   :  { %v145_v4 = vmul.f32 %v245_v3, %v144_v0  ;;  %v247_v7 = vpop.eup %246 }
  0x40   :  { %v155_v12 = vmul.f32 %v247_v7, %v154_v8 }
  0x41   :  { %v146_v5 = vadd.f32 %v145_v4, %v111_v1 }
  0x43   :  { %248 = vlog2.f32 %v146_v5  ;;  %v158_v13 = vmul.f32 %v157_v9, %v146_v5 }
  0x45   :  { %v159_v17 = vadd.f32 %v158_v13, %v155_v12 }
  0x49   :  { %v249_v14 = vpop.eup %248 }
  0x4a   :  { %v148_v16 = vmul.f32 0.6931472, %v249_v14 }
  0x4c   :  { %v149_v18 = vsub.f32 %v148_v16, %v216_v59 }
  0x4e   :  { %v160_v19 = vmul.f32 %v159_v17, %v149_v18 }
  0x50   :  { %v171_v20 = vsel %vm170_vm0, %v160_v19, 0.0 }
  0x51   :  { %173 = vadd.xlane.f32.xlu0 %v171_v20 }
  0xc4   :  { %v174_v21 = vpop.xlane.xlu0 %173 }
  0xc5   :  { %v175_v22 = vrot.slane %v174_v21, 4 }
  0xc7   :  { %v176_v23 = vadd.f32 %v175_v22, %v174_v21 }
  0xc9   :  { %v177_v24 = vrot.slane %v176_v23, 2 }
  0xcb   :  { %v178_v25 = vadd.f32 %v177_v24, %v176_v23 }
  0xcd   :  { %v179_v26 = vrot.slane %v178_v25, 1 }
  0xcf   :  { %v180_v27 = vadd.f32 %v179_v26, %v178_v25 }
  0xd1   :  { %235 = vpush %v180_v27 }
 0x102   :  { %s236_s24 = spop %235 }
 0x103   :  { %s189_s25 = smul.f32 0.00390625, %s236_s24 }
 0x105   :  { %191 = sst [smem:[#allocation8]] %s189_s25 }
 0x106   :  { %200 = dma.smem_to_hbm %s308_s26, 16, %s198_s23, [#allocation6]  }
 0x107   :  { %302 = dma.done.wait [#allocation6], 16  }
 0x108   :  { %303 = vsyncadd [#allocation6], 4294967280 }
 0x109   :  { %205 = sfence }
 0x10a   :  { %206 = vsyncpa [#allocation4], 1 }
 0x10b   :  { %207 = vsyncpa [#allocation5], 1 }
 0x10c   :  { %208 = vsyncpa [#allocation6], 1 }

</bundles_post_ra>
